<compile_context>
chip_gen: v5e
topology: v5e:2x2
jax: 0.10.0
libtpu: 0.0.40
codegen_flags: <defaults>
</compile_context>

<pallas_src>
import jax
import jax.numpy as jnp
from jax import lax
from jax.experimental import pallas as pl
from jax.experimental.pallas import tpu as pltpu  # noqa: F401  (kept for the batched/bf16 TODO variant)


H1_PAD = 128   # lane-dense padded classifier hidden dim (30 -> 128)
C_PAD = 128    # lane-dense padded class dim (4 -> 128)
_NEG_INF = jnp.float32(-1e30)


def pad_classifier_params(w1, b1, w2, b2):
    """One-time (init) lane-dense padding of the classifier parameters.

    Zero-padded w1 cols / b1 entries give ReLU(0)=0, which feeds zero rows of w2,
    so padding is mathematically inert.  The class mask is folded into b2: padded
    logit lanes are -1e30 straight out of the bias add, so the in-kernel
    log-softmax denominator only sees the real classes.
    """
    f32 = jnp.float32
    D, H1 = w1.shape
    C = w2.shape[1]
    w1p = jnp.zeros((D, H1_PAD), f32).at[:, :H1].set(w1.astype(f32))
    b1p = jnp.zeros((1, H1_PAD), f32).at[:, :H1].set(b1.astype(f32).reshape(1, H1))
    w2p = jnp.zeros((H1_PAD, C_PAD), f32).at[:H1, :C].set(w2.astype(f32))
    b2p = jnp.full((1, C_PAD), _NEG_INF, f32).at[:, :C].set(b2.astype(f32).reshape(1, C))
    return w1p, b1p, w2p, b2p


def _classifier_kernel(x_ref, w1_ref, b1_ref, w2_ref, b2_ref, o_ref):
    # x_ref: (B, TB, D) -- only the final T-block of the sequence is DMA'd in.
    # w1: (D, H1P); b1: (1, H1P); w2: (H1P, CP); b2: (1, CP); o: (B, CP)
    x_last = x_ref[:, x_ref.shape[1] - 1, :]        # (B, D): last time step, in-VMEM select

    h = jnp.dot(x_last, w1_ref[...], preferred_element_type=jnp.float32) + b1_ref[...]
    h = jnp.maximum(h, 0.0)                         # ReLU; padded cols stay exactly 0
    logits = jnp.dot(h, w2_ref[...], preferred_element_type=jnp.float32) + b2_ref[...]
    # padded class lanes are already -1e30 via the folded bias -> no iota/where needed

    # numerically-stable log_softmax over the lane-dense (128-wide) class axis
    m = jnp.max(logits, axis=-1, keepdims=True)
    z = logits - m
    lse = jnp.log(jnp.sum(jnp.exp(z), axis=-1, keepdims=True))
    o_ref[...] = z - lse


def class_classifier_forward(x, w1p, b1p, w2p, b2p, *, num_classes, slice_output=True):
    """x: (B, T, D) float; padded params from pad_classifier_params.

    Returns (B, num_classes) log-probabilities of the last time step
    (PyTorch `Class_Classifier.forward` semantics), or the padded (B, 128)
    slab when slice_output=False (for fused consumers).
    """
    B, T, D = x.shape
    f32 = jnp.float32
    x = x.astype(f32)

    if T % 8 == 0:
        # Fetch only the last sublane-aligned 8-step block of the sequence;
        # last dim D is the full array dim, second-last is 8 -> (8,128) rule holds.
        tb = 8
        x_in = x
        x_spec = pl.BlockSpec((B, tb, D), lambda: (0, T // 8 - 1, 0))
    else:
        # Non-multiple-of-8 T: slice to the last step in the wrapper instead.
        tb = 1
        x_in = lax.slice_in_dim(x, T - 1, T, axis=1)
        x_spec = pl.BlockSpec((B, tb, D), lambda: (0, 0, 0))

    full = lambda shape: pl.BlockSpec(shape, lambda: (0,) * len(shape))

    flops = 2 * B * (D * H1_PAD + H1_PAD * C_PAD)
    bytes_accessed = 4 * (B * tb * D + D * H1_PAD + H1_PAD
                          + H1_PAD * C_PAD + C_PAD + B * C_PAD)

    out_p = pl.pallas_call(
        _classifier_kernel,
        out_shape=jax.ShapeDtypeStruct((B, C_PAD), f32),
        grid=(),
        in_specs=[
            x_spec,                 # only the last T-block; last-step select in-kernel
            full((D, H1_PAD)),
            full((1, H1_PAD)),
            full((H1_PAD, C_PAD)),
            full((1, C_PAD)),
        ],
        out_specs=full((B, C_PAD)),
        cost_estimate=pl.CostEstimate(
            flops=flops,
            transcendentals=B * C_PAD + B,
            bytes_accessed=bytes_accessed,
        ),
    )(x_in, w1p, b1p, w2p, b2p)

    # TODO(synk): for large B, grid over batch with TB>=128 (v5e) / >=256 (v6e/v7x)
    # rows per step, constant index_maps for the weights (VMEM-resident), bf16 matmul
    # operands with f32 accumulation on v6e/v7x, dimension_semantics=("parallel",)
    # to shard across v7x's 2 TensorCores, and budget the (TB, 8, D) block against
    # v7x's 64 MiB VMEM / 32 MiB default scoped limit.  Unnecessary at B=2.

    if slice_output:
        # TODO(synk): drop this lane-sparse slice (or alias into the consumer's
        # buffer) when downstream can consume the padded (B, 128) log-prob slab.
        return out_p[:, :num_classes]
    return out_p


def init_params(key, in_dim, hidden, num_classes):
    """Deterministic init mimicking nn.Linear's U(-1/sqrt(fan_in), 1/sqrt(fan_in))."""
    k1, k2, k3, k4 = jax.random.split(key, 4)
    lim1 = 1.0 / jnp.sqrt(in_dim)
    lim2 = 1.0 / jnp.sqrt(hidden)
    w1 = jax.random.uniform(k1, (in_dim, hidden), jnp.float32, -lim1, lim1)
    b1 = jax.random.uniform(k2, (hidden,), jnp.float32, -lim1, lim1)
    w2 = jax.random.uniform(k3, (hidden, num_classes), jnp.float32, -lim2, lim2)
    b2 = jax.random.uniform(k4, (num_classes,), jnp.float32, -lim2, lim2)
    return w1, b1, w2, b2


if __name__ == "__main__":
    # Module-implied sizes: hidden_dim=32, bidirectional LSTM -> D = 64,
    # classifier hidden = 30, num_classes = 4 (beat type), batch=2, seq=8.
    B, T, HID, NDIR, C = 2, 8, 32, 2, 4
    D = HID * NDIR

    key = jax.random.PRNGKey(0)
    kx, kp = jax.random.split(key)
    x = jax.random.normal(kx, (B, T, D), jnp.float32)
    w1, b1, w2, b2 = init_params(kp, D, 30, C)

    # One-time init-side padding (hoisted out of the forward path per review).
    w1p, b1p, w2p, b2p = pad_classifier_params(w1, b1, w2, b2)
    w1p, b1p, w2p, b2p = jax.block_until_ready((w1p, b1p, w2p, b2p))

    out = class_classifier_forward(x, w1p, b1p, w2p, b2p, num_classes=C)
    out = jax.block_until_ready(out)

    # pure-jnp reference (same math as the PyTorch module)
    x_last = x[:, -1, :]
    ref = jax.nn.log_softmax(jnp.maximum(x_last @ w1 + b1, 0.0) @ w2 + b2, axis=-1)

    assert out.shape == (B, C)
    assert jnp.allclose(jnp.sum(jnp.exp(out), axis=-1), 1.0, atol=1e-5)
    assert jnp.allclose(out, ref, atol=1e-5, rtol=1e-5)
    print("KERNEL_OK")
</pallas_src>

<mosaic_0001>
module attributes {stable_mosaic.version = 11 : i64} {
  func.func @_classifier_kernel(%arg0: memref<2x8x64xf32, #tpu.memory_space<vmem>>, %arg1: memref<64x128xf32, #tpu.memory_space<vmem>>, %arg2: memref<1x128xf32, #tpu.memory_space<vmem>>, %arg3: memref<128x128xf32, #tpu.memory_space<vmem>>, %arg4: memref<1x128xf32, #tpu.memory_space<vmem>>, %arg5: memref<2x128xf32, #tpu.memory_space<vmem>>) attributes {dimension_semantics = [], scalar_prefetch = 0 : i64, scratch_operands = 0 : i64, tpu.core_type = #tpu.core_type<tc>} {
    %c0 = arith.constant 0 : index
    %c7 = arith.constant 7 : index
    %c0_0 = arith.constant 0 : index
    %0 = vector.load %arg0[%c0, %c7, %c0_0] : memref<2x8x64xf32, #tpu.memory_space<vmem>>, vector<2x1x64xf32>
    %1 = vector.shape_cast %0 : vector<2x1x64xf32> to vector<2x64xf32>
    %c0_1 = arith.constant 0 : index
    %c0_2 = arith.constant 0 : index
    %2 = vector.load %arg1[%c0_1, %c0_2] : memref<64x128xf32, #tpu.memory_space<vmem>>, vector<64x128xf32>
    %cst = arith.constant dense<0.000000e+00> : vector<2x128xf32>
    %3 = tpu.matmul %1, %2, %cst {dimension_numbers = #tpu.dot_dimension_numbers<[1], [0], [0], [1], [0, 0, 1, 1], [], []>} : vector<2x64xf32>, vector<64x128xf32>, vector<2x128xf32> -> vector<2x128xf32>
    %c0_3 = arith.constant 0 : index
    %c0_4 = arith.constant 0 : index
    %4 = vector.load %arg2[%c0_3, %c0_4] : memref<1x128xf32, #tpu.memory_space<vmem>>, vector<1x128xf32>
    %5 = vector.broadcast %4 : vector<1x128xf32> to vector<2x128xf32>
    %6 = arith.addf %3, %5 : vector<2x128xf32>
    %cst_5 = arith.constant 0.000000e+00 : f32
    %7 = vector.broadcast %cst_5 : f32 to vector<2x128xf32>
    %8 = arith.maximumf %6, %7 : vector<2x128xf32>
    %c0_6 = arith.constant 0 : index
    %c0_7 = arith.constant 0 : index
    %9 = vector.load %arg3[%c0_6, %c0_7] : memref<128x128xf32, #tpu.memory_space<vmem>>, vector<128x128xf32>
    %cst_8 = arith.constant dense<0.000000e+00> : vector<2x128xf32>
    %10 = tpu.matmul %8, %9, %cst_8 {dimension_numbers = #tpu.dot_dimension_numbers<[1], [0], [0], [1], [0, 0, 1, 1], [], []>} : vector<2x128xf32>, vector<128x128xf32>, vector<2x128xf32> -> vector<2x128xf32>
    %c0_9 = arith.constant 0 : index
    %c0_10 = arith.constant 0 : index
    %11 = vector.load %arg4[%c0_9, %c0_10] : memref<1x128xf32, #tpu.memory_space<vmem>>, vector<1x128xf32>
    %12 = vector.broadcast %11 : vector<1x128xf32> to vector<2x128xf32>
    %13 = arith.addf %10, %12 : vector<2x128xf32>
    %cst_11 = arith.constant dense<0xFF800000> : vector<2xf32>
    %14 = vector.multi_reduction <maximumf>, %13, %cst_11 [1] : vector<2x128xf32> to vector<2xf32>
    %15 = vector.shape_cast %14 : vector<2xf32> to vector<2x1xf32>
    %16 = vector.broadcast %15 : vector<2x1xf32> to vector<2x128xf32>
    %17 = arith.subf %13, %16 : vector<2x128xf32>
    %18 = math.exp %17 : vector<2x128xf32>
    %cst_12 = arith.constant dense<0.000000e+00> : vector<2xf32>
    %19 = vector.multi_reduction <add>, %18, %cst_12 [1] : vector<2x128xf32> to vector<2xf32>
    %20 = vector.shape_cast %19 : vector<2xf32> to vector<2x1xf32>
    %21 = math.log %20 : vector<2x1xf32>
    %22 = vector.broadcast %21 : vector<2x1xf32> to vector<2x128xf32>
    %23 = arith.subf %17, %22 : vector<2x128xf32>
    %c0_13 = arith.constant 0 : index
    %c0_14 = arith.constant 0 : index
    %24 = vector.load %arg5[%c0_13, %c0_14] : memref<2x128xf32, #tpu.memory_space<vmem>>, vector<2x128xf32>
    tpu.vector_store %arg5[%c0_13, %c0_14], %23 {strides = array<i32>} : memref<2x128xf32, #tpu.memory_space<vmem>>, vector<2x128xf32>,
    return
  }
}

</mosaic_0001>

<bundles_post_ra>
// kernel: tpu_custom_call.1
= control target key start
LH: loop header
LB: loop body
LE: loop exit
PB: predicated region body
PF: predicated region fallthrough
CT: control target
= control target key end

     0   :  { %10 = vsyncpa [#allocation3], 0  ;;  %s352_s0 = inlined_call_operand.hbm [shape: f32[2,8,64], index: 0, kind: input, shape index: {}]   ;;  %s353_s1 = inlined_call_operand.hbm [shape: f32[64,128], index: 1, kind: input, shape index: {}]   ;;  %s354_s2 = inlined_call_operand.vmem [shape: f32[1,128], index: 2, kind: input, shape index: {}]   ;;  %s355_s3 = inlined_call_operand.hbm [shape: f32[128,128], index: 3, kind: input, shape index: {}]   ;;  %s356_s4 = inlined_call_operand.vmem [shape: f32[1,128], index: 4, kind: input, shape index: {}]   ;;  %s357_s5 = inlined_call_operand.hbm [shape: f32[2,128], index: 5, kind: output, shape index: {}]  }
   0x1   :  { %11 = vsyncpa [#allocation6], 0 }
   0x2   :  { %12 = vsyncpa [#allocation4], 0  ;;  %s30_s20 = sshll.u32 %s353_s1, 4  ;;  %s298_s21 = smov [#allocation5]   ;;  %s31_s20 = int_to_ptr.hbm [resolvable:$true] %s30_s20 }
   0x3   :  { %s32_s22 = sshll.u32 %s298_s21, 4  ;;  %s17_s25 = sshll.u32 %s352_s0, 4  ;;  %s33_s22 = int_to_ptr.vmem [resolvable:$true] %s32_s22  ;;  %s18_s25 = int_to_ptr.hbm [resolvable:$true] %s17_s25 }
   0x4   :  { %s299_s26 = smov 128   ;;  %s300_s27 = smov 8  }
   0x5   :  { %38 = dma.hbm_to_vmem [thread:$0]  %s31_s20, 1024, %s33_s22, [#allocation6], %s299_s26, %s299_s26, %s300_s27  }
   0x6   :  { %s301_s28 = smov [#allocation2]   ;;  %s45_s7 = sshll.u32 %s355_s3, 4  ;;  %s46_s7 = int_to_ptr.hbm [resolvable:$true] %s45_s7 }
   0x7   :  { %s19_s29 = sshll.u32 %s301_s28, 4  ;;  %s302_s1 = smov [#allocation7]   ;;  %s20_s29 = int_to_ptr.vmem [resolvable:$true] %s19_s29 }
   0x8   :  { %25 = dma.hbm_to_vmem [thread:$0]  %s18_s25, 256, %s20_s29, [#allocation3], %s299_s26, %s299_s26, %s300_s27  }
   0x9   :  { %s47_s8 = sshll.u32 %s302_s1, 4  ;;  %s48_s8 = int_to_ptr.vmem [resolvable:$true] %s47_s8 }
   0xa   :  { %53 = dma.hbm_to_vmem [thread:$0]  %s46_s7, 2048, %s48_s8, [#allocation6], %s299_s26, %s299_s26, %s300_s27  }
   0xb   :  { %292 = dma.done.wait [#allocation3], 256  }
   0xc   :  { %293 = vsyncadd [#allocation3], 4294967040 }
   0xd   :  { %294 = dma.done.wait [#allocation6], 3072  }
   0xe   :  { %295 = vsyncadd [#allocation6], 4294964224  ;;  %v77_v0 = vld [vmem:[#allocation5 + $0x38] sm:$0xff]  ;;  %v76_v1 = vld [vmem:[#allocation5 + $0x30] sm:$0xff]  ;;  %vm85_vm0 = vcmask 1041409   ;;  %vm87_vm1 = vcmask 523264  }
   0xf   :  { %98 = vmatpush.msra.mxu0 %v77_v0  ;;  %v75_v2 = vld [vmem:[#allocation5 + $0x28] sm:$0xff]  ;;  %v126_v3 = vld [vmem:[#allocation7 + $0x78] sm:$0xff]  ;;  %v125_v4 = vld [vmem:[#allocation7 + $0x70] sm:$0xff]  ;;  %vm151_vm2 = vcmask 1041408  }
  0x10   :  { %v74_v5 = vld [vmem:[#allocation5 + $0x20] sm:$0xff]  ;;  %131 = vmatpush.msra.mxu1 %v126_v3  ;;  %v124_v6 = vld [vmem:[#allocation7 + $0x68] sm:$0xff]  ;;  %v73_v7 = vld [vmem:[#allocation5 + $0x18] sm:$0xff] }
  0x11   :  { %99 = vmatpush.msra.mxu0 %v76_v1  ;;  %v69_v8 = vld [vmem:[#allocation2 + $0xf] sm:$0x1]  ;;  %v123_v9 = vld [vmem:[#allocation7 + $0x60] sm:$0xff]  ;;  %v72_v10 = vld [vmem:[#allocation5 + $0x10] sm:$0xff] }
  0x12   :  { %132 = vmatpush.msra.mxu1 %v125_v4  ;;  %v84_v11 = vrot.slane %v69_v8, 7  ;;  %v122_v12 = vld [vmem:[#allocation7 + $0x58] sm:$0xff]  ;;  %v71_v13 = vld [vmem:[#allocation5 + $0x8] sm:$0xff]  ;;  %v68_v14 = vld [vmem:[#allocation2 + $0x7] sm:$0x1] }
  0x13   :  { %100 = vmatpush.msra.mxu0 %v75_v2  ;;  %v121_v15 = vld [vmem:[#allocation7 + $0x50] sm:$0xff]  ;;  %v70_v16 = vld [vmem:[#allocation5] sm:$0xff]  ;;  %v120_v18 = vld [vmem:[#allocation7 + $0x48] sm:$0xff] }
  0x14   :  { %133 = vmatpush.msra.mxu1 %v124_v6  ;;  %v86_v17 = vsel %vm85_vm0, %v84_v11, %v68_v14  ;;  %v119_v19 = vld [vmem:[#allocation7 + $0x40] sm:$0xff]  ;;  %v118_v20 = vld [vmem:[#allocation7 + $0x38] sm:$0xff]  ;;  %v117_v21 = vld [vmem:[#allocation7 + $0x30] sm:$0xff] }
  0x15   :  { %101 = vmatpush.msra.mxu0 %v74_v5  ;;  %v116_v22 = vld [vmem:[#allocation7 + $0x28] sm:$0xff]  ;;  %v115_v23 = vld [vmem:[#allocation7 + $0x20] sm:$0xff]  ;;  %v114_v24 = vld [vmem:[#allocation7 + $0x18] sm:$0xff] }
  0x16   :  { %134 = vmatpush.msra.mxu1 %v123_v9  ;;  %v113_v25 = vld [vmem:[#allocation7 + $0x10] sm:$0xff]  ;;  %v112_v26 = vld [vmem:[#allocation7 + $0x8] sm:$0xff]  ;;  %v111_v27 = vld [vmem:[#allocation7] sm:$0xff] }
  0x17   :  { %102 = vmatpush.msra.mxu0 %v73_v7  ;;  %v190_v28 = vld [vmem:[%s354_s2] ss:$0 sm:$0xff]  ;;  %s303_s2 = smov [#allocation8]  }
  0x18   :  { %135 = vmatpush.msra.mxu1 %v122_v12  ;;  %v191_v32 = vld [vmem:[%s356_s4] ss:$0 sm:$0xff]  ;;  %s170_s11 = sshll.u32 %s303_s2, 4  ;;  %s172_s4 = sshll.u32 %s357_s5, 4  ;;  %s171_s11 = int_to_ptr.vmem [resolvable:$true] %s170_s11  ;;  %s173_s4 = int_to_ptr.hbm [resolvable:$true] %s172_s4 }
  0x19   :  { %103 = vmatpush.msra.mxu0 %v72_v10 }
  0x1a   :  { %136 = vmatpush.msra.mxu1 %v121_v15 }
  0x1b   :  { %104 = vmatpush.msra.mxu0 %v71_v13 }
  0x1c   :  { %137 = vmatpush.msra.mxu1 %v120_v18 }
  0x1d   :  { %105 = vmatpush.msra.mxu0 %v70_v16 }
  0x1e   :  { %183 = vmatmul.msk.f32.vlgmr.msra.gmra.mxu0 %vm87_vm1, %v86_v17  ;;  %138 = vmatpush.msra.mxu1 %v119_v19 }
  0x20   :  { %139 = vmatpush.msra.mxu1 %v118_v20 }
  0x22   :  { %140 = vmatpush.msra.mxu1 %v117_v21 }
  0x24   :  { %141 = vmatpush.msra.mxu1 %v116_v22 }
  0x26   :  { %142 = vmatpush.msra.mxu1 %v115_v23 }
  0x28   :  { %143 = vmatpush.msra.mxu1 %v114_v24 }
  0x2a   :  { %144 = vmatpush.msra.mxu1 %v113_v25 }
  0x2c   :  { %145 = vmatpush.msra.mxu1 %v112_v26 }
  0x2e   :  { %146 = vmatpush.msra.mxu1 %v111_v27 }
  0x9b   :  { %v107_v29 = vpop.f32.mrf.mxu0 }
  0x9c   :  { %v108_v30 = vadd.f32 %v190_v28, %v107_v29 }
  0x9e   :  { %v110_v31 = vmax.f32 %v108_v30, 0.0 }
  0xa0   :  { %147 = vmatmul.f32.vlgmr.msra.gmra.mxu1 %v110_v31 }
 0x11d   :  { %v148_v33 = vpop.f32.mrf.mxu1 }
 0x11e   :  { %v149_v34 = vadd.f32 %v191_v32, %v148_v33 }
 0x120   :  { %v152_v35 = vsel %vm151_vm2, %v149_v34, -inf }
 0x121   :  { %153 = vmax.xlane.f32.xlu0 %v152_v35 }
 0x194   :  { %v154_v36 = vpop.xlane.xlu0 %153 }
 0x195   :  { %v155_v37 = vsub.f32 %v149_v34, %v154_v36 }
 0x197   :  { %v156_v38 = vmul.f32 1.442695, %v155_v37 }
 0x199   :  { %192 = vpow2.f32 %v156_v38 }
 0x19f   :  { %v193_v39 = vpop.eup %192 }
 0x1a0   :  { %v158_v40 = vsel %vm151_vm2, %v193_v39, 0.0 }
 0x1a1   :  { %159 = vadd.xlane.f32.xlu0 %v158_v40 }
 0x214   :  { %v160_v41 = vpop.xlane.xlu0 %159 }
 0x215   :  { %194 = vlog2.f32 %v160_v41 }
 0x21b   :  { %v195_v42 = vpop.eup %194 }
 0x21c   :  { %v162_v43 = vmul.f32 0.6931472, %v195_v42 }
 0x21e   :  { %v163_v44 = vsub.f32 %v155_v37, %v162_v43 }
 0x220   :  { %164 = vst [vmem:[#allocation8] sm:$0x3] %v163_v44 }
 0x221   :  { %175 = dma.vmem_to_hbm [thread:$0]  %s171_s11, 32, %s173_s4, [#allocation4]  }
 0x222   :  { %296 = dma.done.wait [#allocation4], 32  }
 0x223   :  { %297 = vsyncadd [#allocation4], 4294967264 }
 0x224   :  { %180 = vsyncpa [#allocation3], 1 }
 0x225   :  { %181 = vsyncpa [#allocation6], 1 }
 0x226   :  { %182 = vsyncpa [#allocation4], 1 }

</bundles_post_ra>
